<compile_context>
chip_gen: v7x
topology: tpu7x:2x2x1
jax: 0.10.0
libtpu: 0.0.40
codegen_flags: <defaults>
</compile_context>

<pallas_src>
import functools

import numpy as np
import jax
import jax.numpy as jnp
from jax.experimental import pallas as pl
from jax.experimental.pallas import tpu as pltpu


def _round_up(x: int, m: int) -> int:
    return ((x + m - 1) // m) * m


def _cov_kernel(h_ref, w_ref, b_ref, ltri_ref, diag_ref, dsel_ref,
                c_ref, ld_ref, *, compute_dtype):
    # h_ref    : (tm, k*n_in)    f32 (cast to compute_dtype in-kernel)
    # w_ref    : (k*n_in, k*nn2) bf16/f32 block-diagonal weight (resident)
    # b_ref    : (1, k*nn2)      f32 bias tiled k times (resident)
    # ltri_ref : (1, k*nn2)      f32 strictly-lower-triangular mask (resident)
    # diag_ref : (1, k*nn2)      f32 diagonal mask (resident)
    # dsel_ref : (k*nn2, k)      f32 per-sample diagonal selector (resident)
    # c_ref    : (tm, k*nn2)     packed C output (lane-dense)
    # ld_ref   : (tm, k)         packed log_det output
    x = h_ref[...].astype(compute_dtype)            # in-kernel cast (hidden under matmul)
    out = jnp.dot(x, w_ref[...], preferred_element_type=jnp.float32) + b_ref[...]

    # Epilogue mirrors the PyTorch module exactly:
    #   C = out * ltri_mask + exp(out) * diag_mask
    # exp() runs on the EUP slot (free vs. the vst/DMA slots that bind).
    # NOTE: on a partial last grid tile the padded rows may hold garbage and
    # exp() of them can be inf/nan; their stores are masked by Pallas and
    # nothing is carried across tiles, so results are unaffected.
    c_ref[...] = (out * ltri_ref[...] + jnp.exp(out) * diag_ref[...]).astype(c_ref.dtype)

    # log_det = sum of the (pre-exp) diagonal entries per sample, expressed as
    # a tiny matmul so the store is k lanes wide (not a (tm,1) masked stream).
    ld_ref[...] = jnp.dot(out, dsel_ref[...], preferred_element_type=jnp.float32)


@functools.partial(jax.jit,
                   static_argnames=("n_out", "block_rows", "use_bf16", "out_dtype"))
def cov_layer_forward(h, weight, bias, *, n_out,
                      block_rows: int = 1024,
                      use_bf16: bool = True,
                      out_dtype=jnp.float32):
    """Pallas equivalent of CovLayer.forward.

    h      : (n, n_in) float32
    weight : (n_in, n_out*n_out) float32   (transpose of torch Linear.weight)
    bias   : (n_out*n_out,) float32
    returns (C, log_det) with C: (n, n_out, n_out) [out_dtype], log_det: (n,) f32
    """
    n, n_in = h.shape
    nn2 = n_out * n_out
    assert weight.shape == (n_in, nn2)
    assert bias.shape == (nn2,)

    in_dtype = jnp.bfloat16 if use_bf16 else jnp.float32
    itm = 2 if use_bf16 else 4
    c_bytes = jnp.dtype(out_dtype).itemsize

    # ---- sample packing: k samples per 128-lane row (lane-dense output) ----
    k = max(1, 128 // nn2)
    # Cap k so the (k*n_in, k*nn2) block-diagonal weight stays modest in VMEM.
    while k > 1 and (k * n_in) * (k * nn2) * itm > 16 * 1024 * 1024:
        k //= 2
    W_lanes = k * nn2          # packed output width (128 when nn2 divides 128)
    KD = k * n_in              # packed reduction dim
    n_pad = _round_up(n, k)
    n_rows = n_pad // k

    h_p = h.astype(jnp.float32)
    if n_pad > n:
        # Padded rows produce out = bias (finite); sliced off below.
        h_p = jnp.pad(h_p, ((0, n_pad - n), (0, 0)))
    h_p = h_p.reshape(n_rows, KD)            # free row-major view under jit

    # Block-diagonal weight: k shifted copies of W.  W is cast to bf16 in the
    # wrapper (it is resident / reused every grid step); h is NOT cast here.
    w_bd = jax.scipy.linalg.block_diag(*([weight.astype(jnp.float32)] * k))
    w_bd = w_bd.astype(in_dtype)             # (KD, W_lanes)
    b_p = jnp.tile(bias.astype(jnp.float32), k).reshape(1, W_lanes)

    # Masks / diagonal selector -- passed as inputs (NOT captured constants).
    jidx = np.arange(nn2)
    r, c = jidx // n_out, jidx % n_out
    ltri_flat = (c < r).astype(np.float32)   # strictly lower triangular
    diag_flat = (c == r).astype(np.float32)  # diagonal
    ltri_p = jnp.asarray(np.tile(ltri_flat, k).reshape(1, W_lanes))
    diag_p = jnp.asarray(np.tile(diag_flat, k).reshape(1, W_lanes))
    dsel_np = np.zeros((W_lanes, k), np.float32)
    for g in range(k):
        dsel_np[g * nn2:(g + 1) * nn2, g] = diag_flat
    dsel = jnp.asarray(dsel_np)

    # ---- row tile from a per-generation VMEM budget ----
    try:
        vmem_cap = int(pltpu.get_tpu_info().vmem_capacity_bytes)
    except Exception:
        vmem_cap = 64 * 1024 * 1024          # conservative (v7x per-TC)
    budget = int(0.55 * vmem_cap)

    # Resident operands (conservatively counted double-buffered).
    resident = 2 * (itm * KD * W_lanes + 3 * 4 * W_lanes + 4 * W_lanes * k)

    def io_bytes(tm):                        # double-buffered streaming tiles
        return 2 * tm * (4 * KD + c_bytes * W_lanes + 4 * k)

    tm = max(8, block_rows // k)
    # Cap so large batches get >= ~4 grid steps (pipelining + v7x megacore).
    tm = min(tm, max(8, _round_up(pl.cdiv(n_rows, 4), 8)))
    tm = _round_up(tm, 8)
    while tm > 8 and resident + io_bytes(tm) > budget:
        tm = _round_up(tm // 2, 8)
    if tm >= n_rows:
        tm = n_rows                          # full extent (small batch)
    grid_m = pl.cdiv(n_rows, tm)

    need = resident + io_bytes(tm)
    vmem_limit = int(min(int(0.9 * vmem_cap), max(2 * need, 32 * 1024 * 1024)))

    cost = pl.CostEstimate(
        flops=2 * n_rows * KD * W_lanes + 2 * n_rows * W_lanes * k,
        transcendentals=n_rows * W_lanes,
        bytes_accessed=(n_rows * KD * 4 + KD * W_lanes * itm + 3 * W_lanes * 4
                        + W_lanes * k * 4 + n_rows * W_lanes * c_bytes
                        + n_rows * k * 4),
    )

    kernel = functools.partial(_cov_kernel, compute_dtype=in_dtype)

    c_packed, ld_packed = pl.pallas_call(
        kernel,
        grid=(grid_m,),
        in_specs=[
            pl.BlockSpec((tm, KD), lambda i: (i, 0)),        # h: tiled over batch
            pl.BlockSpec((KD, W_lanes), lambda i: (0, 0)),   # W (block-diag): resident
            pl.BlockSpec((1, W_lanes), lambda i: (0, 0)),    # bias: resident
            pl.BlockSpec((1, W_lanes), lambda i: (0, 0)),    # ltri mask: resident
            pl.BlockSpec((1, W_lanes), lambda i: (0, 0)),    # diag mask: resident
            pl.BlockSpec((W_lanes, k), lambda i: (0, 0)),    # diag selector: resident
        ],
        out_specs=(
            pl.BlockSpec((tm, W_lanes), lambda i: (i, 0)),   # packed C (lane-dense)
            pl.BlockSpec((tm, k), lambda i: (i, 0)),         # packed log_det
        ),
        out_shape=(
            jax.ShapeDtypeStruct((n_rows, W_lanes), out_dtype),
            jax.ShapeDtypeStruct((n_rows, k), jnp.float32),
        ),
        compiler_params=pltpu.CompilerParams(
            dimension_semantics=("parallel",),   # megacore sharding on v7x
            vmem_limit_bytes=vmem_limit,
        ),
        cost_estimate=cost,
    )(h_p, w_bd, b_p, ltri_p, diag_p, dsel)

    # Free row-major reinterpretation back to the module's layout.
    C = c_packed.reshape(n_pad, nn2)[:n].reshape(n, n_out, n_out)
    log_det = ld_packed.reshape(n_pad)[:n]
    return C, log_det


def _reference(h, weight, bias, n_out, use_bf16=True):
    # Pure-JAX reference mirroring the PyTorch semantics (same matmul precision
    # as the kernel so the comparison is tight).
    n = h.shape[0]
    if use_bf16:
        out = jnp.dot(h.astype(jnp.bfloat16), weight.astype(jnp.bfloat16),
                      preferred_element_type=jnp.float32) + bias
    else:
        out = h @ weight + bias
    out = out.reshape(n, n_out, n_out)
    ltri_mask = jnp.tril(jnp.ones((n_out, n_out), jnp.float32), k=-1)
    diag_mask = jnp.eye(n_out, dtype=jnp.float32)
    C = out * ltri_mask + jnp.exp(out) * diag_mask
    log_det = (out * diag_mask).sum(axis=2).sum(axis=1)
    return C, log_det


if __name__ == "__main__":
    # Small shapes consistent with the module: batch n=8, n_in=32, n_out=4.
    n, n_in, n_out = 8, 32, 4

    key = jax.random.PRNGKey(0)
    k_h, k_w, k_b = jax.random.split(key, 3)

    h = jax.random.normal(k_h, (n, n_in), dtype=jnp.float32)

    # Deterministic Linear(n_in, n_out*n_out) init, uniform(-1/sqrt(n_in), +).
    bound = 1.0 / (n_in ** 0.5)
    weight = jax.random.uniform(
        k_w, (n_in, n_out * n_out), dtype=jnp.float32, minval=-bound, maxval=bound
    )
    bias = jax.random.uniform(
        k_b, (n_out * n_out,), dtype=jnp.float32, minval=-bound, maxval=bound
    )

    C, log_det = cov_layer_forward(h, weight, bias, n_out=n_out)
    jax.block_until_ready((C, log_det))

    C_ref, ld_ref = _reference(h, weight, bias, n_out)
    assert C.shape == (n, n_out, n_out) and log_det.shape == (n,)
    assert jnp.allclose(C, C_ref, atol=1e-4, rtol=1e-4)
    assert jnp.allclose(log_det, ld_ref, atol=1e-4, rtol=1e-4)

    # Batch neither divisible by the packing factor k nor by the row tile:
    # exercises the zero-padded packing rows and a partial last grid tile.
    n2 = 158
    h2 = jax.random.normal(jax.random.PRNGKey(1), (n2, n_in), dtype=jnp.float32)
    C2, ld2 = cov_layer_forward(h2, weight, bias, n_out=n_out, block_rows=64)
    jax.block_until_ready((C2, ld2))
    C2_ref, ld2_ref = _reference(h2, weight, bias, n_out)
    assert jnp.allclose(C2, C2_ref, atol=1e-4, rtol=1e-4)
    assert jnp.allclose(ld2, ld2_ref, atol=1e-4, rtol=1e-4)

    print("KERNEL_OK")
</pallas_src>

<mosaic_0001>
module attributes {stable_mosaic.version = 11 : i64} {
  func.func @_cov_kernel(%arg0: i32, %arg1: memref<1x256xf32, #tpu.memory_space<vmem>>, %arg2: memref<256x128xbf16, #tpu.memory_space<vmem>>, %arg3: memref<1x128xf32, #tpu.memory_space<vmem>>, %arg4: memref<1x128xf32, #tpu.memory_space<vmem>>, %arg5: memref<1x128xf32, #tpu.memory_space<vmem>>, %arg6: memref<128x8xf32, #tpu.memory_space<vmem>>, %arg7: memref<1x128xf32, #tpu.memory_space<vmem>>, %arg8: memref<1x8xf32, #tpu.memory_space<vmem>>) attributes {dimension_semantics = [#tpu.dimension_semantics<parallel>], iteration_bounds = array<i64: 1>, scalar_prefetch = 0 : i64, scratch_operands = 0 : i64, tpu.core_type = #tpu.core_type<tc>, window_params = [{transform_indices = @transform_0, window_bounds = array<i64: 1, 256>}, {pipeline_mode = #tpu.pipeline_mode<synchronous>, transform_indices = @transform_1, window_bounds = array<i64: 256, 128>}, {pipeline_mode = #tpu.pipeline_mode<synchronous>, transform_indices = @transform_2, window_bounds = array<i64: 1, 128>}, {pipeline_mode = #tpu.pipeline_mode<synchronous>, transform_indices = @transform_3, window_bounds = array<i64: 1, 128>}, {pipeline_mode = #tpu.pipeline_mode<synchronous>, transform_indices = @transform_4, window_bounds = array<i64: 1, 128>}, {pipeline_mode = #tpu.pipeline_mode<synchronous>, transform_indices = @transform_5, window_bounds = array<i64: 128, 8>}, {transform_indices = @transform_6, window_bounds = array<i64: 1, 128>}, {transform_indices = @transform_7, window_bounds = array<i64: 1, 8>}]} {
    %c0 = arith.constant 0 : index
    %c0_0 = arith.constant 0 : index
    %0 = vector.load %arg1[%c0, %c0_0] : memref<1x256xf32, #tpu.memory_space<vmem>>, vector<1x256xf32>
    %1 = arith.truncf %0 : vector<1x256xf32> to vector<1x256xbf16>
    %c0_1 = arith.constant 0 : index
    %c0_2 = arith.constant 0 : index
    %2 = vector.load %arg2[%c0_1, %c0_2] : memref<256x128xbf16, #tpu.memory_space<vmem>>, vector<256x128xbf16>
    %cst = arith.constant dense<0.000000e+00> : vector<1x128xf32>
    %3 = tpu.matmul %1, %2, %cst {dimension_numbers = #tpu.dot_dimension_numbers<[1], [0], [0], [1], [0, 0, 1, 1], [], []>} : vector<1x256xbf16>, vector<256x128xbf16>, vector<1x128xf32> -> vector<1x128xf32>
    %c0_3 = arith.constant 0 : index
    %c0_4 = arith.constant 0 : index
    %4 = vector.load %arg3[%c0_3, %c0_4] : memref<1x128xf32, #tpu.memory_space<vmem>>, vector<1x128xf32>
    %5 = arith.addf %3, %4 : vector<1x128xf32>
    %c0_5 = arith.constant 0 : index
    %c0_6 = arith.constant 0 : index
    %6 = vector.load %arg4[%c0_5, %c0_6] : memref<1x128xf32, #tpu.memory_space<vmem>>, vector<1x128xf32>
    %7 = arith.mulf %5, %6 : vector<1x128xf32>
    %8 = math.exp %5 : vector<1x128xf32>
    %c0_7 = arith.constant 0 : index
    %c0_8 = arith.constant 0 : index
    %9 = vector.load %arg5[%c0_7, %c0_8] : memref<1x128xf32, #tpu.memory_space<vmem>>, vector<1x128xf32>
    %10 = arith.mulf %8, %9 : vector<1x128xf32>
    %11 = arith.addf %7, %10 : vector<1x128xf32>
    %c0_9 = arith.constant 0 : index
    %c0_10 = arith.constant 0 : index
    %12 = vector.load %arg7[%c0_9, %c0_10] : memref<1x128xf32, #tpu.memory_space<vmem>>, vector<1x128xf32>
    tpu.vector_store %arg7[%c0_9, %c0_10], %11 {strides = array<i32>} : memref<1x128xf32, #tpu.memory_space<vmem>>, vector<1x128xf32>,
    %c0_11 = arith.constant 0 : index
    %c0_12 = arith.constant 0 : index
    %13 = vector.load %arg6[%c0_11, %c0_12] : memref<128x8xf32, #tpu.memory_space<vmem>>, vector<128x8xf32>
    %cst_13 = arith.constant dense<0.000000e+00> : vector<1x8xf32>
    %14 = tpu.matmul %5, %13, %cst_13 {dimension_numbers = #tpu.dot_dimension_numbers<[1], [0], [0], [1], [0, 0, 1, 1], [], []>} : vector<1x128xf32>, vector<128x8xf32>, vector<1x8xf32> -> vector<1x8xf32>
    %c0_14 = arith.constant 0 : index
    %c0_15 = arith.constant 0 : index
    %15 = vector.load %arg8[%c0_14, %c0_15] : memref<1x8xf32, #tpu.memory_space<vmem>>, vector<1x8xf32>
    tpu.vector_store %arg8[%c0_14, %c0_15], %14 {strides = array<i32>} : memref<1x8xf32, #tpu.memory_space<vmem>>, vector<1x8xf32>,
    return
  }
  func.func @transform_0(%arg0: i32) -> (i32, i32) {
    %c0_i32 = arith.constant 0 : i32
    %c0_i32_0 = arith.constant 0 : i32
    return %arg0, %c0_i32 : i32, i32
  }
  func.func @transform_1(%arg0: i32) -> (i32, i32) {
    %c0_i32 = arith.constant 0 : i32
    %c0_i32_0 = arith.constant 0 : i32
    %c0_i32_1 = arith.constant 0 : i32
    return %c0_i32, %c0_i32_0 : i32, i32
  }
  func.func @transform_2(%arg0: i32) -> (i32, i32) {
    %c0_i32 = arith.constant 0 : i32
    %c0_i32_0 = arith.constant 0 : i32
    %c0_i32_1 = arith.constant 0 : i32
    return %c0_i32, %c0_i32_0 : i32, i32
  }
  func.func @transform_3(%arg0: i32) -> (i32, i32) {
    %c0_i32 = arith.constant 0 : i32
    %c0_i32_0 = arith.constant 0 : i32
    %c0_i32_1 = arith.constant 0 : i32
    return %c0_i32, %c0_i32_0 : i32, i32
  }
  func.func @transform_4(%arg0: i32) -> (i32, i32) {
    %c0_i32 = arith.constant 0 : i32
    %c0_i32_0 = arith.constant 0 : i32
    %c0_i32_1 = arith.constant 0 : i32
    return %c0_i32, %c0_i32_0 : i32, i32
  }
  func.func @transform_5(%arg0: i32) -> (i32, i32) {
    %c0_i32 = arith.constant 0 : i32
    %c0_i32_0 = arith.constant 0 : i32
    %c0_i32_1 = arith.constant 0 : i32
    return %c0_i32, %c0_i32_0 : i32, i32
  }
  func.func @transform_6(%arg0: i32) -> (i32, i32) {
    %c0_i32 = arith.constant 0 : i32
    %c0_i32_0 = arith.constant 0 : i32
    return %arg0, %c0_i32 : i32, i32
  }
  func.func @transform_7(%arg0: i32) -> (i32, i32) {
    %c0_i32 = arith.constant 0 : i32
    %c0_i32_0 = arith.constant 0 : i32
    return %arg0, %c0_i32 : i32, i32
  }
}

</mosaic_0001>

<bundles_post_ra>
// kernel: tile.8
= control target key start
LH: loop header
LB: loop body
LE: loop exit
PB: predicated region body
PF: predicated region fallthrough
CT: control target
= control target key end

     0   :  { %s22_s0 = inlined_call_operand.vmem [shape: f32[16], index: 0, kind: input, shape index: {}]   ;;  %s23_s1 = inlined_call_operand.vmem [shape: f32[8,16], index: 1, kind: output, shape index: {}]  }
   0x1   :  { %v4_v0 = vld [vmem:[%s22_s0] ss:$0 sm:$0xff] }
   0x2   :  { %5 = vst [vmem:[%s23_s1] sm:$0xff] %v4_v0 }

// kernel: tile.9
= control target key start
LH: loop header
LB: loop body
LE: loop exit
PB: predicated region body
PF: predicated region fallthrough
CT: control target
= control target key end

     0   :  { %s67_s10 = smov 112   ;;  %s68_s11 = smov 80   ;;  %vm3_vm0 = vcmask 130048   ;;  %vm9_vm1 = vcmask 1048448   ;;  %vm15_vm2 = vcmask 917248   ;;  %vm21_vm3 = vcmask 786048   ;;  %s111_s0 = inlined_call_operand.vmem [shape: f32[8,16], index: 0, kind: input, shape index: {}]   ;;  %s112_s1 = inlined_call_operand.vmem [shape: f32[1,128], index: 1, kind: output, shape index: {}]  }
   0x1   :  { %v53_v0 = vld [vmem:[%s111_s0 + $0x7] sm:$0x1]   ;;  %v55_v1 = vld [vmem:[%s111_s0 + $0x5] sm:$0x1]   ;;  %v54_v2 = vld [vmem:[%s111_s0 + $0x6] sm:$0x1]  }
   0x2   :  { %7 = vrot.lane.b32.xlu0 %v53_v0, %s67_s10  ;;  %19 = vrot.lane.b32.xlu1 %v55_v1, %s68_s11  ;;  %v56_v3 = vld [vmem:[%s111_s0 + $0x4] sm:$0x1]   ;;  %v2_v4 = vld [vmem:[%s111_s0] sm:$0x1]   ;;  %s69_s18 = smov 96   ;;  %s70_s19 = smov 64  }
   0x3   :  { %4 = vst.msk [vmem:[#allocation0] sm:$0x1] %vm3_vm0, %v2_v4   ;;  %v57_v5 = vld [vmem:[%s111_s0 + $0x3] sm:$0x1]   ;;  %v58_v6 = vld [vmem:[%s111_s0 + $0x2] sm:$0x1]  }
   0x4   :  { %s71_s24 = smov 48   ;;  %s72_s25 = smov 32   ;;  %v59_v7 = vld [vmem:[%s111_s0 + $0x1] sm:$0x1]   ;;  %vm27_vm4 = vcmask 654848   ;;  %vm33_vm5 = vcmask 523648  }
   0x5   :  { %s73_s0 = smov 16   ;;  %vm39_vm6 = vcmask 392448   ;;  %vm45_vm7 = vcmask 261248  }
   0x6   :  { %13 = vrot.lane.b32.xlu0 %v54_v2, %s69_s18  ;;  %25 = vrot.lane.b32.xlu1 %v56_v3, %s70_s19 }
   0xa   :  { %31 = vrot.lane.b32.xlu0 %v57_v5, %s71_s24  ;;  %37 = vrot.lane.b32.xlu1 %v58_v6, %s72_s25 }
   0xe   :  { %43 = vrot.lane.b32.xlu0 %v59_v7, %s73_s0 }
  0x74   :  { %v8_v8 = vpop.permute.xlu0 %7   ;;  %v20_v9 = vpop.permute.xlu1 %19  }
  0x75   :  { %10 = vst.msk [vmem:[#allocation0] sm:$0x1] %vm9_vm1, %v8_v8  }
  0x78   :  { %v14_v10 = vpop.permute.xlu0 %13   ;;  %v26_v11 = vpop.permute.xlu1 %25  }
  0x79   :  { %16 = vst.msk [vmem:[#allocation0] sm:$0x1] %vm15_vm2, %v14_v10  }
  0x7a   :  { %22 = vst.msk [vmem:[#allocation0] sm:$0x1] %vm21_vm3, %v20_v9  }
  0x7b   :  { %28 = vst.msk [vmem:[#allocation0] sm:$0x1] %vm27_vm4, %v26_v11  }
  0x7c   :  { %v32_v12 = vpop.permute.xlu0 %31   ;;  %v38_v13 = vpop.permute.xlu1 %37  }
  0x7d   :  { %34 = vst.msk [vmem:[#allocation0] sm:$0x1] %vm33_vm5, %v32_v12  }
  0x7e   :  { %40 = vst.msk [vmem:[#allocation0] sm:$0x1] %vm39_vm6, %v38_v13  }
  0x80   :  { %v44_v14 = vpop.permute.xlu0 %43  }
  0x81   :  { %46 = vst.msk [vmem:[#allocation0] sm:$0x1] %vm45_vm7, %v44_v14  }
  0x88   :  { %v50_v15 = vld [vmem:[#allocation0] sm:$0x1] }
  0x89   :  { %52 = vst [vmem:[%s112_s1] sm:$0x1] %v50_v15 }

// kernel: cov_layer_forward.1
= control target key start
LH: loop header
LB: loop body
LE: loop exit
PB: predicated region body
PF: predicated region fallthrough
CT: control target
= control target key end

     0   :  { %v484_v2 = vmov 0.0|0.0   ;;  %v29_v6 = vlaneseq  ;;  %s659_s0 = inlined_call_operand.vmem [shape: f32[1,256], index: 0, kind: input, shape index: {}]   ;;  %s660_s1 = inlined_call_operand.vmem [shape: bf16[256,128], index: 1, kind: input, shape index: {}]   ;;  %s661_s2 = inlined_call_operand.vmem [shape: f32[1,128], index: 2, kind: input, shape index: {}]   ;;  %s662_s3 = inlined_call_operand.vmem [shape: f32[1,128], index: 3, kind: input, shape index: {}]   ;;  %s663_s4 = inlined_call_operand.vmem [shape: f32[1,128], index: 4, kind: input, shape index: {}]   ;;  %s664_s5 = inlined_call_operand.vmem [shape: f32[128,8], index: 5, kind: input, shape index: {}]   ;;  %s665_s6 = inlined_call_operand.vmem [shape: f32[1,128], index: 6, kind: output, shape index: {0}]   ;;  %s666_s7 = inlined_call_operand.hbm [shape: f32[1,8], index: 7, kind: output, shape index: {1}]  }
   0x1   :  { %v442_v0 = vld [vmem:[%s660_s1 + $0x40] sm:$0xff]   ;;  %414 = vmatprep.subr.bf16.mxu1 %v484_v2  ;;  %v444_v3 = vld [vmem:[%s660_s1 + $0x48] sm:$0xff]   ;;  %v446_v5 = vld [vmem:[%s660_s1 + $0x50] sm:$0xff]  }
   0x2   :  { %v443_v1 = vld [vmem:[%s660_s1] sm:$0xff]   ;;  %340 = vmatprep.subr.bf16.mxu0 %v442_v0  ;;  %v445_v4 = vld [vmem:[%s660_s1 + $0x8] sm:$0xff]   ;;  %v447_v7 = vld [vmem:[%s660_s1 + $0x10] sm:$0xff]   ;;  %v30_v9 = vshrl.u32 %v29_v6, 7 }
   0x3   :  { %341 = vmatpush3.bf16.msra.mxu0 %v443_v1  ;;  %v448_v8 = vld [vmem:[%s660_s1 + $0x58] sm:$0xff]   ;;  %v450_v11 = vld [vmem:[%s660_s1 + $0x60] sm:$0xff]   ;;  %v452_v14 = vld [vmem:[%s660_s1 + $0x68] sm:$0xff]  }
   0x4   :  { %342 = vmatprep.subr.bf16.mxu0 %v444_v3  ;;  %v449_v10 = vld [vmem:[%s660_s1 + $0x18] sm:$0xff]   ;;  %v35_v12 = vsub.s32 1, %v30_v9  ;;  %v451_v13 = vld [vmem:[%s660_s1 + $0x20] sm:$0xff]   ;;  %v219_v17 = vld [vmem:[%s664_s5 + $0x8] sm:$0xff] }
   0x5   :  { %v27_v15 = vld [vmem:[%s659_s0] sm:$0x3]  ;;  %v220_v20 = vld [vmem:[%s664_s5 + $0x10] sm:$0xff]  ;;  %v221_v21 = vld [vmem:[%s664_s5 + $0x18] sm:$0xff] }
   0x6   :  { %v218_v16 = vld [vmem:[%s664_s5] sm:$0xff]  ;;  %v36_v18 = vrot.slane %v27_v15, %v35_v12  ;;  %v453_v22 = vld [vmem:[%s660_s1 + $0x28] sm:$0xff]   ;;  %v418_v24 = vpack.c.bf16 %v221_v21, %v220_v20  ;;  %v454_v25 = vld [vmem:[%s660_s1 + $0x70] sm:$0xff]  }
   0x7   :  { %343 = vmatpush3.bf16.msra.mxu0 %v445_v4  ;;  %v415_v19 = vpack.c.bf16 %v219_v17, %v218_v16  ;;  %v222_v26 = vld [vmem:[%s664_s5 + $0x20] sm:$0xff]  ;;  %v223_v27 = vld [vmem:[%s664_s5 + $0x28] sm:$0xff] }
   0x8   :  { %344 = vmatprep.subr.bf16.mxu0 %v446_v5  ;;  %v40_v23 = vpack.c.bf16 %v36_v18, %v36_v18 }
   0x9   :  { %416 = vmatpush3.bf16.msra.mxu1 %v415_v19 }
   0xa   :  { %417 = vmatprep.subr.bf16.mxu1 %v484_v2  ;;  %202 = vmatprep.mubr.bf16.mxu0 %v40_v23 }
   0xb   :  { %345 = vmatpush3.bf16.msra.mxu0 %v447_v7 }
   0xc   :  { %346 = vmatprep.subr.bf16.mxu0 %v448_v8 }
   0xf   :  { %347 = vmatpush3.bf16.msra.mxu0 %v449_v10 }
  0x10   :  { %348 = vmatprep.subr.bf16.mxu0 %v450_v11 }
  0x13   :  { %349 = vmatpush3.bf16.msra.mxu0 %v451_v13 }
  0x14   :  { %350 = vmatprep.subr.bf16.mxu0 %v452_v14 }
  0x15   :  { %13 = vsyncpa [#allocation3], 0  ;;  %v31_v28 = vsub.s32 0, %v30_v9  ;;  %v455_v29 = vld [vmem:[%s660_s1 + $0x30] sm:$0xff]   ;;  %419 = vmatpush3.bf16.msra.mxu1 %v418_v24  ;;  %v421_v30 = vpack.c.bf16 %v223_v27, %v222_v26  ;;  %v456_v31 = vld [vmem:[%s660_s1 + $0x78] sm:$0xff]   ;;  %vm485_vm0 = vmmov 0  }
  0x16   :  { %420 = vmatprep.subr.bf16.mxu1 %v484_v2  ;;  %v224_v32 = vld [vmem:[%s664_s5 + $0x30] sm:$0xff]  ;;  %v225_v33 = vld [vmem:[%s664_s5 + $0x38] sm:$0xff]  ;;  %v226_v37 = vld [vmem:[%s664_s5 + $0x40] sm:$0xff]  ;;  %v486_v50 = vmov 0.0   ;;  %s487_s24 = smov [#allocation2]   ;;  %vm304_vm1 = vcmask 57344  }
  0x17   :  { %351 = vmatpush3.bf16.msra.mxu0 %v453_v22  ;;  %v32_v34 = vrot.slane %v27_v15, %v31_v28  ;;  %v457_v35 = vld [vmem:[%s660_s1 + $0x38] sm:$0xff]   ;;  %v424_v36 = vpack.c.bf16 %v225_v33, %v224_v32  ;;  %v227_v38 = vld [vmem:[%s664_s5 + $0x48] sm:$0xff]  ;;  %v228_v41 = vld [vmem:[%s664_s5 + $0x50] sm:$0xff]  ;;  %411 = vmatprep.mubr.msk.f32.mxu1 %vm485_vm0, %v486_v50  ;;  %s314_s25 = sshll.u32 %s487_s24, 4  ;;  %s315_s25 = int_to_ptr.vmem [resolvable:$true] %s314_s25 }
  0x18   :  { %352 = vmatprep.subr.bf16.mxu0 %v454_v25  ;;  %v427_v40 = vpack.c.bf16 %v227_v38, %v226_v37  ;;  %v229_v42 = vld [vmem:[%s664_s5 + $0x58] sm:$0xff]  ;;  %v230_v44 = vld [vmem:[%s664_s5 + $0x60] sm:$0xff]  ;;  %v231_v45 = vld [vmem:[%s664_s5 + $0x68] sm:$0xff]  ;;  %s464_s26 = scalar_lea.vmem %s315_s25, 32  ;;  %p465_p1 = scmp.lt.s32.totalorder %s315_s25, %s315_s25 }
  0x19   :  { %422 = vmatpush3.bf16.msra.mxu1 %v421_v30  ;;  %v39_v39 = vpack.c.bf16 %v32_v34, %v32_v34  ;;  %v430_v43 = vpack.c.bf16 %v229_v42, %v228_v41  ;;  %v433_v46 = vpack.c.bf16 %v231_v45, %v230_v44  ;;  %v232_v47 = vld [vmem:[%s664_s5 + $0x70] sm:$0xff]  ;;  %v233_v48 = vld [vmem:[%s664_s5 + $0x78] sm:$0xff]  ;;  %v73_v52 = vld [vmem:[%s661_s2] sm:$0x1] }
  0x1a   :  { %423 = vmatprep.subr.bf16.mxu1 %v484_v2  ;;  %v436_v49 = vpack.c.bf16 %v233_v48, %v232_v47  ;;  %v210_v59 = vld [vmem:[%s662_s3] sm:$0x1]  ;;  %s460_s3 = scalar_lea.vmem %s315_s25, 16 }
  0x1b   :  { %353 = vmatpush3.bf16.msra.mxu0 %v455_v29  ;;  %v214_v60 = vld [vmem:[%s663_s4] sm:$0x1]  ;;  %p461_p0 = scmp.ne.s32.totalorder %s315_s25, %s460_s3  ;;  %p466_p2 = scmp.lt.s32.totalorder %s464_s26, %s460_s3 }
  0x1c   :  { %354 = vmatprep.subr.bf16.mxu0 %v456_v31 }
  0x1d   :  { %425 = vmatpush3.bf16.msra.mxu1 %v424_v36  ;;  %p467_p3 = por %p466_p2, %p465_p1 }
  0x1e   :  { %426 = vmatprep.subr.bf16.mxu1 %v484_v2 }
  0x1f   :  { %355 = vmatpush3.bf16.msra.mxu0 %v457_v35  ;;  %p468_p4 = pnand %p467_p3, %p461_p0 }
  0x21   :  { %428 = vmatpush3.bf16.msra.mxu1 %v427_v40 }
  0x22   :  { %203 = vmatmul.mubr.bf16.vlgmr.msra.gmra.mrb[0].mxu0 %v39_v39  ;;  %429 = vmatprep.subr.bf16.mxu1 %v484_v2 }
  0x25   :  { %431 = vmatpush3.bf16.msra.mxu1 %v430_v43 }
  0x26   :  { %432 = vmatprep.subr.bf16.mxu1 %v484_v2 }
  0x29   :  { %434 = vmatpush3.bf16.msra.mxu1 %v433_v46 }
  0x2a   :  { %435 = vmatprep.subr.bf16.mxu1 %v484_v2 }
  0x2d   :  { %437 = vmatpush3.bf16.msra.mxu1 %v436_v49 }
  0xf5   :  { %v356_v51 = vpop.f32.mrb[0].mxu0 }
  0xf6   :  { %v357_v53 = vpop.f32.mrb[1].mxu0 }
  0xf7   :  { %v358_v54 = vadd.f32 %v357_v53, %v356_v51  ;;  %v359_v55 = vpop.f32.mrb[2].mxu0 }
  0xf8   :  { %v360_v56 = vpop.f32.mrb[3].mxu0 }
  0xf9   :  { %v205_v57 = vadd.f32 %v358_v54, %v73_v52 }
  0xfb   :  { %v212_v58 = vmul.f32 1.442695, %v205_v57  ;;  %412 = vmatmul.mubr.f32.vlgmr.msra.gmra.mrb[0].mxu1 %v205_v57  ;;  %v211_v62 = vmul.f32 %v210_v59, %v205_v57 }
  0xfd   :  { %458 = vpow2.f32 %v212_v58 }
 0x107   :  { %v459_v61 = vpop.eup %458 }
 0x108   :  { %v215_v63 = vmul.f32 %v459_v61, %v214_v60 }
 0x10a   :  { %v216_v0 = vadd.f32 %v215_v63, %v211_v62 }
 0x10c   :  { %217 = vst [vmem:[%s665_s6] sm:$0x1] %v216_v0 }
 0x1ce   :  { %v300_v1 = vpop.f32.mrb[0].mxu1 }
 0x1cf   :  { %305 = vst.msk [vmem:[#allocation2] sm:$0x1] %vm304_vm1, %v300_v1  ;;  %v413_v2 = vpop.f32.mrb[1].mxu1 }
 0x1d0   :  { %471 = shalt.err (!%p468_p4)
}
 0x1d1   :  { %s472_s28 = scalar_lea.hbm %s666_s7, 16 }
 0x1d2   :  { %p473_p5 = scmp.ne.s32.totalorder %s666_s7, %s472_s28  ;;  %p476_p6 = scmp.lt.u32.totalorder %s472_s28, %s666_s7 }
 0x1d4   :  { %p478_p7 = pnand %p476_p6, %p473_p5 }
 0x1d6   :  { %481 = shalt.err (!%p478_p7)
}
 0x1d7   :  { %317 = dma.vmem_to_hbm [thread:$0]  %s315_s25, 16, %s666_s7, [#allocation3]  }
 0x1d8   :  { %482 = dma.done.wait [#allocation3], 16  }
 0x1d9   :  { %483 = vsyncadd [#allocation3], 4294967280 }
 0x1da   :  { %323 = vsyncpa [#allocation3], 1 }

</bundles_post_ra>
